<compile_context>
chip_gen: v7x
topology: tpu7x:2x2x1
jax: 0.10.0
libtpu: 0.0.40
codegen_flags: <defaults>
</compile_context>

<pallas_src>
import numpy as np
import jax
import jax.numpy as jnp
from jax.experimental import pallas as pl
from jax.experimental.pallas import tpu as pltpu

IN_DIM = 5 + 12          # 17
HID = 64
N_ECON = 5               # len(EconomyStrategy)  (synthetic choice)
N_ARMY = 3               # len(ArmyStrategy)     (synthetic choice)
N_HEADS = 1 + N_ECON + N_ARMY          # 9  : [value | econ | army]
OUT_DIM = 1 + N_ECON * N_ARMY          # 16 : [value | logp(E*A)]
EPS = 1e-5               # nn.LayerNorm default eps


def _round_up(n, m):
    return ((n + m - 1) // m) * m


def _layernorm(h, gamma, beta):
    mu = jnp.mean(h, axis=-1, keepdims=True)
    var = jnp.mean((h - mu) ** 2, axis=-1, keepdims=True)
    return (h - mu) * jax.lax.rsqrt(var + EPS) * gamma + beta


def _log_softmax(z):
    m = jnp.max(z, axis=-1, keepdims=True)
    s = z - m
    return s - jnp.log(jnp.sum(jnp.exp(s), axis=-1, keepdims=True))


def model_kernel(x_ref, w1_ref, w2_ref, wh_ref, p_ref, out_ref):
    x = x_ref[...]
    p = p_ref[...]                       # (7, HID) packed small params
    b1, g1, be1 = p[0:1, :], p[1:2, :], p[2:3, :]
    b2, g2, be2 = p[3:4, :], p[4:5, :], p[5:6, :]
    bh = p[6:7, :N_HEADS]                # (1, 9) fused head bias

    # fc1 -> LayerNorm -> ReLU
    h = jnp.dot(x, w1_ref[...], preferred_element_type=jnp.float32) + b1
    h = jnp.maximum(_layernorm(h, g1, be1), 0.0)

    # fc2 -> LayerNorm -> ReLU
    h = jnp.dot(h, w2_ref[...], preferred_element_type=jnp.float32) + b2
    h = jnp.maximum(_layernorm(h, g2, be2), 0.0)

    # fused heads: one MXU push for value + economy + army logits
    heads = jnp.dot(h, wh_ref[...], preferred_element_type=jnp.float32) + bh
    value = heads[:, 0:1]                                # (TB, 1)
    ec = _log_softmax(heads[:, 1:1 + N_ECON])            # (TB, E)
    ar = _log_softmax(heads[:, 1 + N_ECON:N_HEADS])      # (TB, A)

    # outer sum ec[:, :, None] + ar[:, None, :] flattened to (TB, E*A),
    # built from static lane slices + broadcast adds (no MXU, no reshape).
    pieces = [value] + [ec[:, e:e + 1] + ar for e in range(N_ECON)]
    out_ref[...] = jnp.concatenate(pieces, axis=-1)      # (TB, 16)


def init_params(key):
    ks = jax.random.split(key, 10)

    def lin(kw, kb, fan_in, fan_out):
        bound = 1.0 / np.sqrt(fan_in)
        w = jax.random.uniform(kw, (fan_in, fan_out), jnp.float32, -bound, bound)
        b = jax.random.uniform(kb, (1, fan_out), jnp.float32, -bound, bound)
        return w, b

    w1, b1 = lin(ks[0], ks[1], IN_DIM, HID)
    w2, b2 = lin(ks[2], ks[3], HID, HID)
    wv, bv = lin(ks[4], ks[5], HID, 1)
    we, bec = lin(ks[6], ks[7], HID, N_ECON)
    wa, ba = lin(ks[8], ks[9], HID, N_ARMY)
    g1 = jnp.ones((1, HID), jnp.float32)
    be1 = jnp.zeros((1, HID), jnp.float32)
    g2 = jnp.ones((1, HID), jnp.float32)
    be2 = jnp.zeros((1, HID), jnp.float32)
    return (w1, b1, g1, be1, w2, b2, g2, be2, wv, bv, we, bec, wa, ba)


def pack_params(params):
    """One-time packing: fused head weight + (7, 64) small-parameter slab."""
    (w1, b1, g1, be1, w2, b2, g2, be2, wv, bv, we, bec, wa, ba) = params
    wh = jnp.concatenate([wv, we, wa], axis=1)                   # (64, 9)
    bh = jnp.concatenate([bv, bec, ba], axis=1)                  # (1, 9)
    bh = jnp.pad(bh, ((0, 0), (0, HID - N_HEADS)))               # (1, 64)
    slab = jnp.concatenate([b1, g1, be1, b2, g2, be2, bh], axis=0)  # (7, 64)
    return (w1, w2, wh, slab)


def forward(x, packed):
    """x: (B, IN_DIM) f32 -> (value (B,1), logp (B, E*A))."""
    w1, w2, wh, slab = packed
    B = x.shape[0]

    # Batch tiling: small batches run as a single tile; large batches are
    # pipelined / sharded across TensorCores via a "parallel" grid axis.
    TB = min(_round_up(B, 8), 512)
    Bp = _round_up(B, TB)
    if Bp != B:
        x = jnp.pad(x, ((0, Bp - B), (0, 0)))
    grid = (Bp // TB,)

    in_specs = [
        pl.BlockSpec((TB, IN_DIM), lambda i: (i, 0)),     # activations: tiled
        pl.BlockSpec(w1.shape, lambda i: (0, 0)),          # weights: resident
        pl.BlockSpec(w2.shape, lambda i: (0, 0)),
        pl.BlockSpec(wh.shape, lambda i: (0, 0)),
        pl.BlockSpec(slab.shape, lambda i: (0, 0)),
    ]
    out_spec = pl.BlockSpec((TB, OUT_DIM), lambda i: (i, 0))
    out_shape = jax.ShapeDtypeStruct((Bp, OUT_DIM), jnp.float32)

    out = pl.pallas_call(
        model_kernel,
        grid=grid,
        in_specs=in_specs,
        out_specs=out_spec,
        out_shape=out_shape,
        compiler_params=pltpu.CompilerParams(
            dimension_semantics=("parallel",)),
    )(x, w1, w2, wh, slab)

    out = out[:B]
    return out[:, :1], out[:, 1:]


def forward_ref(x, params):
    """Pure-JAX reference (mirrors the PyTorch forward)."""
    (w1, b1, g1, be1, w2, b2, g2, be2, wv, bv, we, bec, wa, ba) = params
    h = jnp.maximum(_layernorm(x @ w1 + b1, g1, be1), 0.0)
    h = jnp.maximum(_layernorm(h @ w2 + b2, g2, be2), 0.0)
    value = h @ wv + bv
    ec = jax.nn.log_softmax(h @ we + bec, axis=-1)
    ar = jax.nn.log_softmax(h @ wa + ba, axis=-1)
    bz = x.shape[0]
    logp = (ec[:, :, None] + ar[:, None, :]).reshape(bz, -1)
    return value, logp


if __name__ == "__main__":
    key = jax.random.PRNGKey(0)
    k_param, k_x = jax.random.split(key)

    B = 8
    x = jax.random.normal(k_x, (B, IN_DIM), jnp.float32)
    params = init_params(k_param)
    packed = pack_params(params)

    value, logp = forward(x, packed)
    value = jax.block_until_ready(value)
    logp = jax.block_until_ready(logp)

    v_ref, lp_ref = forward_ref(x, params)
    assert value.shape == (B, 1) and logp.shape == (B, N_ECON * N_ARMY)
    np.testing.assert_allclose(np.asarray(value), np.asarray(v_ref),
                               rtol=1e-5, atol=1e-5)
    np.testing.assert_allclose(np.asarray(logp), np.asarray(lp_ref),
                               rtol=1e-5, atol=1e-5)

    print("KERNEL_OK")
</pallas_src>

<mosaic_0001>
module attributes {stable_mosaic.version = 11 : i64} {
  func.func @model_kernel(%arg0: i32, %arg1: memref<8x17xf32, #tpu.memory_space<vmem>>, %arg2: memref<17x64xf32, #tpu.memory_space<vmem>>, %arg3: memref<64x64xf32, #tpu.memory_space<vmem>>, %arg4: memref<64x9xf32, #tpu.memory_space<vmem>>, %arg5: memref<7x64xf32, #tpu.memory_space<vmem>>, %arg6: memref<8x16xf32, #tpu.memory_space<vmem>>) attributes {dimension_semantics = [#tpu.dimension_semantics<parallel>], iteration_bounds = array<i64: 1>, scalar_prefetch = 0 : i64, scratch_operands = 0 : i64, tpu.core_type = #tpu.core_type<tc>, window_params = [{transform_indices = @transform_0, window_bounds = array<i64: 8, 17>}, {pipeline_mode = #tpu.pipeline_mode<synchronous>, transform_indices = @transform_1, window_bounds = array<i64: 17, 64>}, {pipeline_mode = #tpu.pipeline_mode<synchronous>, transform_indices = @transform_2, window_bounds = array<i64: 64, 64>}, {pipeline_mode = #tpu.pipeline_mode<synchronous>, transform_indices = @transform_3, window_bounds = array<i64: 64, 9>}, {pipeline_mode = #tpu.pipeline_mode<synchronous>, transform_indices = @transform_4, window_bounds = array<i64: 7, 64>}, {transform_indices = @transform_5, window_bounds = array<i64: 8, 16>}]} {
    %c0 = arith.constant 0 : index
    %c0_0 = arith.constant 0 : index
    %0 = vector.load %arg1[%c0, %c0_0] : memref<8x17xf32, #tpu.memory_space<vmem>>, vector<8x17xf32>
    %c0_1 = arith.constant 0 : index
    %c0_2 = arith.constant 0 : index
    %1 = vector.load %arg5[%c0_1, %c0_2] : memref<7x64xf32, #tpu.memory_space<vmem>>, vector<7x64xf32>
    %2 = vector.extract_strided_slice %1 {offsets = [0, 0], sizes = [1, 64], strides = [1, 1]} : vector<7x64xf32> to vector<1x64xf32>
    %3 = vector.extract_strided_slice %1 {offsets = [1, 0], sizes = [1, 64], strides = [1, 1]} : vector<7x64xf32> to vector<1x64xf32>
    %4 = vector.extract_strided_slice %1 {offsets = [2, 0], sizes = [1, 64], strides = [1, 1]} : vector<7x64xf32> to vector<1x64xf32>
    %5 = vector.extract_strided_slice %1 {offsets = [3, 0], sizes = [1, 64], strides = [1, 1]} : vector<7x64xf32> to vector<1x64xf32>
    %6 = vector.extract_strided_slice %1 {offsets = [4, 0], sizes = [1, 64], strides = [1, 1]} : vector<7x64xf32> to vector<1x64xf32>
    %7 = vector.extract_strided_slice %1 {offsets = [5, 0], sizes = [1, 64], strides = [1, 1]} : vector<7x64xf32> to vector<1x64xf32>
    %8 = vector.extract_strided_slice %1 {offsets = [6, 0], sizes = [1, 9], strides = [1, 1]} : vector<7x64xf32> to vector<1x9xf32>
    %c0_3 = arith.constant 0 : index
    %c0_4 = arith.constant 0 : index
    %9 = vector.load %arg2[%c0_3, %c0_4] : memref<17x64xf32, #tpu.memory_space<vmem>>, vector<17x64xf32>
    %cst = arith.constant dense<0.000000e+00> : vector<8x64xf32>
    %10 = tpu.matmul %0, %9, %cst {dimension_numbers = #tpu.dot_dimension_numbers<[1], [0], [0], [1], [0, 0, 1, 1], [], []>} : vector<8x17xf32>, vector<17x64xf32>, vector<8x64xf32> -> vector<8x64xf32>
    %11 = vector.broadcast %2 : vector<1x64xf32> to vector<8x64xf32>
    %12 = arith.addf %10, %11 : vector<8x64xf32>
    %cst_5 = arith.constant dense<0.000000e+00> : vector<8xf32>
    %13 = vector.multi_reduction <add>, %12, %cst_5 [1] : vector<8x64xf32> to vector<8xf32>
    %14 = vector.shape_cast %13 : vector<8xf32> to vector<8x1xf32>
    %cst_6 = arith.constant 6.400000e+01 : f32
    %15 = vector.broadcast %cst_6 : f32 to vector<8x1xf32>
    %16 = arith.divf %14, %15 : vector<8x1xf32>
    %17 = vector.broadcast %16 : vector<8x1xf32> to vector<8x64xf32>
    %18 = arith.subf %12, %17 : vector<8x64xf32>
    %19 = arith.mulf %18, %18 : vector<8x64xf32>
    %cst_7 = arith.constant dense<0.000000e+00> : vector<8xf32>
    %20 = vector.multi_reduction <add>, %19, %cst_7 [1] : vector<8x64xf32> to vector<8xf32>
    %21 = vector.shape_cast %20 : vector<8xf32> to vector<8x1xf32>
    %cst_8 = arith.constant 6.400000e+01 : f32
    %22 = vector.broadcast %cst_8 : f32 to vector<8x1xf32>
    %23 = arith.divf %21, %22 : vector<8x1xf32>
    %24 = vector.broadcast %16 : vector<8x1xf32> to vector<8x64xf32>
    %25 = arith.subf %12, %24 : vector<8x64xf32>
    %cst_9 = arith.constant 9.99999974E-6 : f32
    %26 = vector.broadcast %cst_9 : f32 to vector<8x1xf32>
    %27 = arith.addf %23, %26 : vector<8x1xf32>
    %28 = math.rsqrt %27 : vector<8x1xf32>
    %29 = vector.broadcast %28 : vector<8x1xf32> to vector<8x64xf32>
    %30 = arith.mulf %25, %29 : vector<8x64xf32>
    %31 = vector.broadcast %3 : vector<1x64xf32> to vector<8x64xf32>
    %32 = arith.mulf %30, %31 : vector<8x64xf32>
    %33 = vector.broadcast %4 : vector<1x64xf32> to vector<8x64xf32>
    %34 = arith.addf %32, %33 : vector<8x64xf32>
    %cst_10 = arith.constant 0.000000e+00 : f32
    %35 = vector.broadcast %cst_10 : f32 to vector<8x64xf32>
    %36 = arith.maximumf %34, %35 : vector<8x64xf32>
    %c0_11 = arith.constant 0 : index
    %c0_12 = arith.constant 0 : index
    %37 = vector.load %arg3[%c0_11, %c0_12] : memref<64x64xf32, #tpu.memory_space<vmem>>, vector<64x64xf32>
    %cst_13 = arith.constant dense<0.000000e+00> : vector<8x64xf32>
    %38 = tpu.matmul %36, %37, %cst_13 {dimension_numbers = #tpu.dot_dimension_numbers<[1], [0], [0], [1], [0, 0, 1, 1], [], []>} : vector<8x64xf32>, vector<64x64xf32>, vector<8x64xf32> -> vector<8x64xf32>
    %39 = vector.broadcast %5 : vector<1x64xf32> to vector<8x64xf32>
    %40 = arith.addf %38, %39 : vector<8x64xf32>
    %cst_14 = arith.constant dense<0.000000e+00> : vector<8xf32>
    %41 = vector.multi_reduction <add>, %40, %cst_14 [1] : vector<8x64xf32> to vector<8xf32>
    %42 = vector.shape_cast %41 : vector<8xf32> to vector<8x1xf32>
    %cst_15 = arith.constant 6.400000e+01 : f32
    %43 = vector.broadcast %cst_15 : f32 to vector<8x1xf32>
    %44 = arith.divf %42, %43 : vector<8x1xf32>
    %45 = vector.broadcast %44 : vector<8x1xf32> to vector<8x64xf32>
    %46 = arith.subf %40, %45 : vector<8x64xf32>
    %47 = arith.mulf %46, %46 : vector<8x64xf32>
    %cst_16 = arith.constant dense<0.000000e+00> : vector<8xf32>
    %48 = vector.multi_reduction <add>, %47, %cst_16 [1] : vector<8x64xf32> to vector<8xf32>
    %49 = vector.shape_cast %48 : vector<8xf32> to vector<8x1xf32>
    %cst_17 = arith.constant 6.400000e+01 : f32
    %50 = vector.broadcast %cst_17 : f32 to vector<8x1xf32>
    %51 = arith.divf %49, %50 : vector<8x1xf32>
    %52 = vector.broadcast %44 : vector<8x1xf32> to vector<8x64xf32>
    %53 = arith.subf %40, %52 : vector<8x64xf32>
    %cst_18 = arith.constant 9.99999974E-6 : f32
    %54 = vector.broadcast %cst_18 : f32 to vector<8x1xf32>
    %55 = arith.addf %51, %54 : vector<8x1xf32>
    %56 = math.rsqrt %55 : vector<8x1xf32>
    %57 = vector.broadcast %56 : vector<8x1xf32> to vector<8x64xf32>
    %58 = arith.mulf %53, %57 : vector<8x64xf32>
    %59 = vector.broadcast %6 : vector<1x64xf32> to vector<8x64xf32>
    %60 = arith.mulf %58, %59 : vector<8x64xf32>
    %61 = vector.broadcast %7 : vector<1x64xf32> to vector<8x64xf32>
    %62 = arith.addf %60, %61 : vector<8x64xf32>
    %cst_19 = arith.constant 0.000000e+00 : f32
    %63 = vector.broadcast %cst_19 : f32 to vector<8x64xf32>
    %64 = arith.maximumf %62, %63 : vector<8x64xf32>
    %c0_20 = arith.constant 0 : index
    %c0_21 = arith.constant 0 : index
    %65 = vector.load %arg4[%c0_20, %c0_21] : memref<64x9xf32, #tpu.memory_space<vmem>>, vector<64x9xf32>
    %cst_22 = arith.constant dense<0.000000e+00> : vector<8x9xf32>
    %66 = tpu.matmul %64, %65, %cst_22 {dimension_numbers = #tpu.dot_dimension_numbers<[1], [0], [0], [1], [0, 0, 1, 1], [], []>} : vector<8x64xf32>, vector<64x9xf32>, vector<8x9xf32> -> vector<8x9xf32>
    %67 = vector.broadcast %8 : vector<1x9xf32> to vector<8x9xf32>
    %68 = arith.addf %66, %67 : vector<8x9xf32>
    %69 = vector.extract_strided_slice %68 {offsets = [0, 0], sizes = [8, 1], strides = [1, 1]} : vector<8x9xf32> to vector<8x1xf32>
    %70 = vector.extract_strided_slice %68 {offsets = [0, 1], sizes = [8, 5], strides = [1, 1]} : vector<8x9xf32> to vector<8x5xf32>
    %cst_23 = arith.constant dense<0xFF800000> : vector<8xf32>
    %71 = vector.multi_reduction <maximumf>, %70, %cst_23 [1] : vector<8x5xf32> to vector<8xf32>
    %72 = vector.shape_cast %71 : vector<8xf32> to vector<8x1xf32>
    %73 = vector.broadcast %72 : vector<8x1xf32> to vector<8x5xf32>
    %74 = arith.subf %70, %73 : vector<8x5xf32>
    %75 = math.exp %74 : vector<8x5xf32>
    %cst_24 = arith.constant dense<0.000000e+00> : vector<8xf32>
    %76 = vector.multi_reduction <add>, %75, %cst_24 [1] : vector<8x5xf32> to vector<8xf32>
    %77 = vector.shape_cast %76 : vector<8xf32> to vector<8x1xf32>
    %78 = math.log %77 : vector<8x1xf32>
    %79 = vector.broadcast %78 : vector<8x1xf32> to vector<8x5xf32>
    %80 = arith.subf %74, %79 : vector<8x5xf32>
    %81 = vector.extract_strided_slice %68 {offsets = [0, 6], sizes = [8, 3], strides = [1, 1]} : vector<8x9xf32> to vector<8x3xf32>
    %cst_25 = arith.constant dense<0xFF800000> : vector<8xf32>
    %82 = vector.multi_reduction <maximumf>, %81, %cst_25 [1] : vector<8x3xf32> to vector<8xf32>
    %83 = vector.shape_cast %82 : vector<8xf32> to vector<8x1xf32>
    %84 = vector.broadcast %83 : vector<8x1xf32> to vector<8x3xf32>
    %85 = arith.subf %81, %84 : vector<8x3xf32>
    %86 = math.exp %85 : vector<8x3xf32>
    %cst_26 = arith.constant dense<0.000000e+00> : vector<8xf32>
    %87 = vector.multi_reduction <add>, %86, %cst_26 [1] : vector<8x3xf32> to vector<8xf32>
    %88 = vector.shape_cast %87 : vector<8xf32> to vector<8x1xf32>
    %89 = math.log %88 : vector<8x1xf32>
    %90 = vector.broadcast %89 : vector<8x1xf32> to vector<8x3xf32>
    %91 = arith.subf %85, %90 : vector<8x3xf32>
    %92 = vector.extract_strided_slice %80 {offsets = [0, 0], sizes = [8, 1], strides = [1, 1]} : vector<8x5xf32> to vector<8x1xf32>
    %93 = vector.broadcast %92 : vector<8x1xf32> to vector<8x3xf32>
    %94 = arith.addf %93, %91 : vector<8x3xf32>
    %95 = vector.extract_strided_slice %80 {offsets = [0, 1], sizes = [8, 1], strides = [1, 1]} : vector<8x5xf32> to vector<8x1xf32>
    %96 = vector.broadcast %95 : vector<8x1xf32> to vector<8x3xf32>
    %97 = arith.addf %96, %91 : vector<8x3xf32>
    %98 = vector.extract_strided_slice %80 {offsets = [0, 2], sizes = [8, 1], strides = [1, 1]} : vector<8x5xf32> to vector<8x1xf32>
    %99 = vector.broadcast %98 : vector<8x1xf32> to vector<8x3xf32>
    %100 = arith.addf %99, %91 : vector<8x3xf32>
    %101 = vector.extract_strided_slice %80 {offsets = [0, 3], sizes = [8, 1], strides = [1, 1]} : vector<8x5xf32> to vector<8x1xf32>
    %102 = vector.broadcast %101 : vector<8x1xf32> to vector<8x3xf32>
    %103 = arith.addf %102, %91 : vector<8x3xf32>
    %104 = vector.extract_strided_slice %80 {offsets = [0, 4], sizes = [8, 1], strides = [1, 1]} : vector<8x5xf32> to vector<8x1xf32>
    %105 = vector.broadcast %104 : vector<8x1xf32> to vector<8x3xf32>
    %106 = arith.addf %105, %91 : vector<8x3xf32>
    %107 = tpu.concatenate %69, %94, %97, %100, %103, %106 in 1 : vector<8x1xf32>, vector<8x3xf32>, vector<8x3xf32>, vector<8x3xf32>, vector<8x3xf32>, vector<8x3xf32> -> vector<8x16xf32>
    %c0_27 = arith.constant 0 : index
    %c0_28 = arith.constant 0 : index
    %108 = vector.load %arg6[%c0_27, %c0_28] : memref<8x16xf32, #tpu.memory_space<vmem>>, vector<8x16xf32>
    tpu.vector_store %arg6[%c0_27, %c0_28], %107 {strides = array<i32>} : memref<8x16xf32, #tpu.memory_space<vmem>>, vector<8x16xf32>,
    return
  }
  func.func @transform_0(%arg0: i32) -> (i32, i32) {
    %c0_i32 = arith.constant 0 : i32
    %c0_i32_0 = arith.constant 0 : i32
    return %arg0, %c0_i32 : i32, i32
  }
  func.func @transform_1(%arg0: i32) -> (i32, i32) {
    %c0_i32 = arith.constant 0 : i32
    %c0_i32_0 = arith.constant 0 : i32
    %c0_i32_1 = arith.constant 0 : i32
    return %c0_i32, %c0_i32_0 : i32, i32
  }
  func.func @transform_2(%arg0: i32) -> (i32, i32) {
    %c0_i32 = arith.constant 0 : i32
    %c0_i32_0 = arith.constant 0 : i32
    %c0_i32_1 = arith.constant 0 : i32
    return %c0_i32, %c0_i32_0 : i32, i32
  }
  func.func @transform_3(%arg0: i32) -> (i32, i32) {
    %c0_i32 = arith.constant 0 : i32
    %c0_i32_0 = arith.constant 0 : i32
    %c0_i32_1 = arith.constant 0 : i32
    return %c0_i32, %c0_i32_0 : i32, i32
  }
  func.func @transform_4(%arg0: i32) -> (i32, i32) {
    %c0_i32 = arith.constant 0 : i32
    %c0_i32_0 = arith.constant 0 : i32
    %c0_i32_1 = arith.constant 0 : i32
    return %c0_i32, %c0_i32_0 : i32, i32
  }
  func.func @transform_5(%arg0: i32) -> (i32, i32) {
    %c0_i32 = arith.constant 0 : i32
    %c0_i32_0 = arith.constant 0 : i32
    return %arg0, %c0_i32 : i32, i32
  }
}

</mosaic_0001>

<bundles_post_ra>
// kernel: tpu_custom_call.1
= control target key start
LH: loop header
LB: loop body
LE: loop exit
PB: predicated region body
PF: predicated region fallthrough
CT: control target
= control target key end

     0   :  { %10 = vsyncpa [#allocation3], 0  ;;  %s805_s0 = inlined_call_operand.vmem [shape: f32[8,17], index: 0, kind: input, shape index: {}]   ;;  %s806_s1 = inlined_call_operand.hbm [shape: f32[17,64], index: 1, kind: input, shape index: {}]   ;;  %s807_s2 = inlined_call_operand.vmem [shape: f32[64,64], index: 2, kind: input, shape index: {}]   ;;  %s808_s3 = inlined_call_operand.vmem [shape: f32[64,9], index: 3, kind: input, shape index: {}]   ;;  %s809_s4 = inlined_call_operand.vmem [shape: f32[7,64], index: 4, kind: input, shape index: {}]   ;;  %s810_s5 = inlined_call_operand.hbm [shape: f32[8,16], index: 5, kind: output, shape index: {}]  }
   0x1   :  { %11 = vsyncpa [#allocation4], 0  ;;  %s635_s18 = smov [#allocation2]   ;;  %s587_s22 = scalar_lea.hbm %s806_s1, 384 }
   0x2   :  { %s19_s19 = sshll.u32 %s635_s18, 4  ;;  %p588_p0 = scmp.ne.s32.totalorder %s806_s1, %s587_s22  ;;  %s20_s19 = int_to_ptr.vmem [resolvable:$true] %s19_s19 }
   0x3   :  { %p591_p1 = scmp.lt.u32.totalorder %s587_s22, %s806_s1 }
   0x5   :  { %p593_p2 = pnand %p591_p1, %p588_p0 }
   0x7   :  { %596 = shalt.err (!%p593_p2)
}
   0x8   :  { %s597_s27 = scalar_lea.vmem %s20_s19, 384  ;;  %p602_p4 = scmp.lt.s32.totalorder %s20_s19, %s20_s19 }
   0x9   :  { %p598_p3 = scmp.ne.s32.totalorder %s20_s19, %s597_s27  ;;  %p603_p5 = scmp.lt.s32.totalorder %s597_s27, %s597_s27 }
   0xb   :  { %p604_p6 = por %p603_p5, %p602_p4 }
   0xd   :  { %p605_p7 = pnand %p604_p6, %p598_p3 }
   0xf   :  { %608 = shalt.err (!%p605_p7)
}
  0x10   :  { %s636_s28 = smov 128   ;;  %s637_s29 = smov 8  }
  0x11   :  { %25 = dma.hbm_to_vmem [thread:$0]  %s806_s1, 384, %s20_s19, [#allocation3], %s636_s28, %s636_s28, %s637_s29  }
  0x12   :  { %631 = dma.done.wait [#allocation3], 384  }
  0x13   :  { %632 = vsyncadd [#allocation3], 4294966912  ;;  %v638_v0 = vmov 0.0|0.0   ;;  %vm639_vm0 = vmmov 0   ;;  %v640_v1 = vmov 0.0   ;;  %v37_v2 = vld [vmem:[#allocation2] sm:$0xff]  ;;  %v40_v7 = vlaneseq }
  0x14   :  { %524 = vmatprep.subr.bf16.mxu0 %v638_v0  ;;  %483 = vmatprep.mubr.msk.f32.mxu0 %vm639_vm0, %v640_v1  ;;  %v38_v3 = vld [vmem:[#allocation2 + $0x8] sm:$0xff]  ;;  %v39_v5 = vld [vmem:[#allocation2 + $0x10] sm:$0x1]  ;;  %vm48_vm1 = vcmask 1040384   ;;  %v35_v6 = vld [vmem:[%s805_s0] sm:$0xff]  ;;  %vm44_vm2 = vcmask 138240  }
  0x15   :  { %527 = vmatprep.subr.bf16.mxu1 %v638_v0  ;;  %502 = vmatprep.mubr.msk.f32.mxu1 %vm639_vm0, %v640_v1  ;;  %v525_v4 = vpack.c.bf16 %v38_v3, %v37_v2  ;;  %v705_v8 = vshrl.u32 %v40_v7, 7  ;;  %v711_v10 = vld [vmem:[%s809_s4] sm:$0x7f]  ;;  %vm122_vm3 = vcmask 523264   ;;  %v149_v22 = vld [vmem:[%s807_s2 + $0x8] sm:$0xff]  ;;  %v150_v23 = vld [vmem:[%s807_s2 + $0x10] sm:$0xff] }
  0x16   :  { %v148_v21 = vld [vmem:[%s807_s2] sm:$0xff]  ;;  %v151_v25 = vld [vmem:[%s807_s2 + $0x18] sm:$0xff]  ;;  %v153_v28 = vld [vmem:[%s807_s2 + $0x28] sm:$0xff]  ;;  %vm360_vm4 = vcmask 72752   ;;  %vm342_vm5 = vcmask 48136   ;;  %vm353_vm6 = vcmask 39936  }
  0x17   :  { %526 = vmatpush3.bf16.msra.mxu0 %v525_v4  ;;  %v42_v9 = vsub.s32 0, %v705_v8  ;;  %v528_v24 = vpack.c.bf16 %v149_v22, %v148_v21  ;;  %v531_v26 = vpack.c.bf16 %v151_v25, %v150_v23  ;;  %v152_v27 = vld [vmem:[%s807_s2 + $0x20] sm:$0xff]  ;;  %v154_v30 = vld [vmem:[%s807_s2 + $0x30] sm:$0xff]  ;;  %v155_v31 = vld [vmem:[%s807_s2 + $0x38] sm:$0xff]  ;;  %v139_v36 = vsub.s32 1, %v705_v8  ;;  %s642_s11 = smov 122  }
  0x18   :  { %481 = vmatprep.subr.mxu0 %v640_v1  ;;  %v534_v29 = vpack.c.bf16 %v153_v28, %v152_v27  ;;  %v537_v32 = vpack.c.bf16 %v155_v31, %v154_v30  ;;  %v144_v37 = vsub.s32 2, %v705_v8  ;;  %v158_v45 = vsub.s32 3, %v705_v8  ;;  %v257_v56 = vld [vmem:[%s808_s3] sm:$0xff]  ;;  %v258_v57 = vld [vmem:[%s808_s3 + $0x8] sm:$0xff]  ;;  %v259_v59 = vld [vmem:[%s808_s3 + $0x10] sm:$0xff]  ;;  %s648_s12 = smov 126  }
  0x19   :  { %v43_v11 = vrot.slane %v711_v10, %v42_v9  ;;  %529 = vmatpush3.bf16.msra.mxu1 %v528_v24  ;;  %v140_v38 = vrot.slane %v711_v10, %v139_v36  ;;  %v540_v58 = vpack.c.bf16 %v258_v57, %v257_v56  ;;  %v260_v60 = vld [vmem:[%s808_s3 + $0x18] sm:$0xff]  ;;  %v261_v62 = vld [vmem:[%s808_s3 + $0x20] sm:$0xff]  ;;  %v262_v63 = vld [vmem:[%s808_s3 + $0x28] sm:$0xff]  ;;  %v248_v9 = vsub.s32 4, %v705_v8  ;;  %s649_s13 = smov 123   ;;  %s650_s14 = smov 1  }
  0x1a   :  { %530 = vmatprep.subr.bf16.mxu1 %v638_v0  ;;  %v145_v41 = vrot.slane %v711_v10, %v144_v37  ;;  %v159_v46 = vrot.slane %v711_v10, %v158_v45  ;;  %v543_v61 = vpack.c.bf16 %v260_v60, %v259_v59  ;;  %v263_v2 = vld [vmem:[%s808_s3 + $0x30] sm:$0xff]  ;;  %v264_v3 = vld [vmem:[%s808_s3 + $0x38] sm:$0xff]  ;;  %s641_s3 = smov 127   ;;  %vm371_vm7 = vcmask 23552   ;;  %s651_s15 = smov 4  }
  0x1b   :  { %482 = vmatpush3.msk.msra.mxu0 %vm48_vm1, %v39_v5  ;;  %v549_v4 = vpack.c.bf16 %v264_v3, %v263_v2  ;;  %s652_s16 = smov 7   ;;  %vm424_vm8 = vcmask 7168   ;;  %vm426_vm9 = vcmask 31744   ;;  %vm428_vm10 = vcmask 56320   ;;  %s653_s17 = smov [#allocation5]  }
  0x1c   :  { %484 = vmatmul.mubr.msk.f32.vlgmr.msra.gmra.mrb[0].mxu0 %vm44_vm2, %v35_v6  ;;  %539 = vmatprep.subr.bf16.mxu0 %v638_v0  ;;  %vm430_vm11 = vcmask 80896   ;;  %s442_s18 = sshll.u32 %s653_s17, 4  ;;  %vm432_vm12 = vcmask 105472   ;;  %vm434_vm13 = vcmask 130048   ;;  %s443_s18 = int_to_ptr.vmem [resolvable:$true] %s442_s18 }
  0x1d   :  { %521 = vmatprep.mubr.msk.f32.mxu0 %vm639_vm0, %v640_v1  ;;  %532 = vmatpush3.bf16.msra.mxu1 %v531_v26  ;;  %v546_v1 = vpack.c.bf16 %v262_v63, %v261_v62  ;;  %s609_s19 = scalar_lea.vmem %s443_s18, 128  ;;  %p614_p9 = scmp.lt.s32.totalorder %s443_s18, %s443_s18 }
  0x1e   :  { %533 = vmatprep.subr.bf16.mxu1 %v638_v0  ;;  %541 = vmatpush3.bf16.msra.mxu0 %v540_v58  ;;  %p610_p8 = scmp.ne.s32.totalorder %s443_s18, %s609_s19  ;;  %p615_p10 = scmp.lt.s32.totalorder %s609_s19, %s609_s19 }
  0x1f   :  { %542 = vmatprep.subr.bf16.mxu0 %v638_v0 }
  0x20   :  { %p616_p11 = por %p615_p10, %p614_p9 }
  0x21   :  { %535 = vmatpush3.bf16.msra.mxu1 %v534_v29 }
  0x22   :  { %536 = vmatprep.subr.bf16.mxu1 %v638_v0  ;;  %544 = vmatpush3.bf16.msra.mxu0 %v543_v61  ;;  %p617_p12 = pnand %p616_p11, %p610_p8 }
  0x23   :  { %545 = vmatprep.subr.bf16.mxu0 %v638_v0 }
  0x25   :  { %538 = vmatpush3.bf16.msra.mxu1 %v537_v32 }
  0x26   :  { %547 = vmatpush3.bf16.msra.mxu0 %v546_v1 }
  0x27   :  { %548 = vmatprep.subr.bf16.mxu0 %v638_v0  ;;  %v267_v0 = vsub.s32 6, %v705_v8 }
  0x2a   :  { %550 = vmatpush3.bf16.msra.mxu0 %v549_v4 }
  0xef   :  { %v118_v12 = vpop.f32.mrb[0].mxu0 }
  0xf0   :  { %v119_v13 = vadd.f32 %v118_v12, %v43_v11  ;;  %v485_v14 = vpop.f32.mrb[1].mxu0  ;;  %v253_v11 = vsub.s32 5, %v705_v8  ;;  %v249_v12 = vrot.slane %v711_v10, %v248_v9 }
  0xf2   :  { %v123_v15 = vsel %vm122_vm3, %v119_v13, 0.0 }
  0xf3   :  { %124 = vadd.xlane.f32.xlu0 %v123_v15  ;;  %v254_v15 = vrot.slane %v711_v10, %v253_v11 }
 0x180   :  { %v125_v16 = vpop.xlane.xlu0 %124 }
 0x181   :  { %v127_v17 = vmul.f32 0.015625, %v125_v16 }
 0x183   :  { %v128_v18 = vsub.f32 %v119_v13, %v127_v17 }
 0x185   :  { %v129_v19 = vmul.f32 %v128_v18, %v128_v18 }
 0x187   :  { %v130_v20 = vsel %vm122_vm3, %v129_v19, 0.0  ;;  %v268_v19 = vrot.slane %v711_v10, %v267_v0 }
 0x188   :  { %131 = vadd.xlane.f32.xlu0 %v130_v20 }
 0x215   :  { %v132_v33 = vpop.xlane.xlu0 %131 }
 0x216   :  { %v133_v34 = vmul.f32 0.015625, %v132_v33  ;;  %v643_v33 = vmov 1  }
 0x217   :  { %570 = vset.pattern.permute.xlu0 %v643_v33 }
 0x218   :  { %v134_v35 = vadd.f32 1e-05, %v133_v34 }
 0x21a   :  { %575 = vrsqrt.f32 %v134_v35 }
 0x224   :  { %v576_v39 = vpop.eup %575 }
 0x225   :  { %v136_v40 = vmul.f32 %v576_v39, %v128_v18 }
 0x227   :  { %v141_v42 = vmul.f32 %v140_v38, %v136_v40  ;;  %v644_v40 = vmov 2  }
 0x229   :  { %v146_v43 = vadd.f32 %v145_v41, %v141_v42  ;;  %v645_v41 = vmov 3   ;;  %v646_v42 = vmov 4  }
 0x22b   :  { %v147_v44 = vmax.f32 %v146_v43, 0.0  ;;  %v647_v43 = vmov 5  }
 0x22d   :  { %503 = vmatmul.mubr.msk.f32.vlgmr.msra.gmra.mrb[0].mxu1 %vm122_vm3, %v147_v44 }
 0x300   :  { %v229_v47 = vpop.f32.mrb[0].mxu1 }
 0x301   :  { %v230_v48 = vadd.f32 %v229_v47, %v159_v46  ;;  %v504_v49 = vpop.f32.mrb[1].mxu1 }
 0x303   :  { %v233_v50 = vsel %vm122_vm3, %v230_v48, 0.0 }
 0x304   :  { %234 = vadd.xlane.f32.xlu1 %v233_v50 }
 0x391   :  { %v235_v51 = vpop.xlane.xlu1 %234 }
 0x392   :  { %v236_v52 = vmul.f32 0.015625, %v235_v51 }
 0x394   :  { %v237_v53 = vsub.f32 %v230_v48, %v236_v52 }
 0x396   :  { %v238_v54 = vmul.f32 %v237_v53, %v237_v53 }
 0x398   :  { %v239_v55 = vsel %vm122_vm3, %v238_v54, 0.0 }
 0x399   :  { %240 = vadd.xlane.f32.xlu1 %v239_v55 }
 0x426   :  { %v241_v5 = vpop.xlane.xlu1 %240 }
 0x427   :  { %v242_v6 = vmul.f32 0.015625, %v241_v5 }
 0x429   :  { %v243_v7 = vadd.f32 1e-05, %v242_v6 }
 0x42b   :  { %577 = vrsqrt.f32 %v243_v7 }
 0x435   :  { %v578_v13 = vpop.eup %577 }
 0x436   :  { %v245_v14 = vmul.f32 %v578_v13, %v237_v53 }
 0x438   :  { %v250_v16 = vmul.f32 %v249_v12, %v245_v14 }
 0x43a   :  { %v255_v17 = vadd.f32 %v254_v15, %v250_v16 }
 0x43c   :  { %v256_v18 = vmax.f32 %v255_v17, 0.0 }
 0x43e   :  { %522 = vmatmul.mubr.msk.f32.vlgmr.msra.gmra.mrb[2].mxu0 %vm122_vm3, %v256_v18 }
 0x511   :  { %v338_v20 = vpop.f32.mrb[2].mxu0 }
 0x512   :  { %v786_v21 = vadd.f32 %v338_v20, %v268_v19  ;;  %v523_v22 = vpop.f32.mrb[3].mxu0 }
 0x514   :  { %v361_v23 = vsel %vm360_vm4, %v786_v21, -inf  ;;  %v343_v24 = vsel %vm342_vm5, %v786_v21, -inf }
 0x515   :  { %362 = vmax.xlane.f32.xlu1 %v361_v23  ;;  %344 = vmax.xlane.f32.xlu0 %v343_v24 }
 0x5a2   :  { %v345_v25 = vpop.xlane.xlu0 %344  ;;  %v363_v10 = vpop.xlane.xlu1 %362 }
 0x5a3   :  { %v346_v26 = vsub.f32 %v786_v21, %v345_v25  ;;  %v364_v28 = vsub.f32 %v786_v21, %v363_v10 }
 0x5a5   :  { %v347_v27 = vmul.f32 1.442695, %v346_v26  ;;  %v365_v31 = vmul.f32 1.442695, %v364_v28 }
 0x5a7   :  { %579 = vpow2.f32 %v347_v27 }
 0x5a8   :  { %581 = vpow2.f32 %v365_v31 }
 0x5b1   :  { %v580_v8 = vpop.eup %579 }
 0x5b2   :  { %350 = vrot.lane.b32.xlu0 %v580_v8, %s641_s3  ;;  %v582_v32 = vpop.eup %581 }
 0x624   :  { %v351_v29 = vpop.permute.xlu0 %350 }
 0x625   :  { %v354_v30 = vsel %vm353_vm6, %v351_v29, 0.0 }
 0x626   :  { %355 = vadd.xlane.f32.xlu1 %v354_v30 }
 0x637   :  { %368 = vrot.lane.b32.xlu1 %v582_v32, %s642_s11 }
 0x6b3   :  { %v356_v34 = vpop.xlane.xlu1 %355 }
 0x6b4   :  { %583 = vlog2.f32 %v356_v34 }
 0x6b7   :  { %v369_v35 = vpop.permute.xlu1 %368 }
 0x6b8   :  { %v372_v36 = vsel %vm371_vm7, %v369_v35, 0.0 }
 0x6b9   :  { %373 = vadd.xlane.f32.xlu1 %v372_v36 }
 0x6be   :  { %v584_v37 = vpop.eup %583 }
 0x6bf   :  { %v358_v38 = vmul.f32 0.6931472, %v584_v37 }
 0x6c1   :  { %v359_v39 = vsub.f32 %v346_v26, %v358_v38 }
 0x6c3   :  { %380 = vperm.xlu0 %570, %v359_v39  }
 0x6c7   :  { %571 = vset.pattern.permute.xlu0 %v644_v40 }
 0x6c8   :  { %385 = vperm.xlu0 %571, %v359_v39  }
 0x6cc   :  { %572 = vset.pattern.permute.xlu0 %v645_v41 }
 0x6cd   :  { %390 = vperm.xlu0 %572, %v359_v39  }
 0x6d1   :  { %573 = vset.pattern.permute.xlu0 %v646_v42 }
 0x6d2   :  { %395 = vperm.xlu0 %573, %v359_v39  }
 0x6d6   :  { %574 = vset.pattern.permute.xlu0 %v647_v43 }
 0x6d7   :  { %400 = vperm.xlu0 %574, %v359_v39  }
 0x742   :  { %v381_v45 = vpop.permute.xlu0 %380 }
 0x746   :  { %v374_v44 = vpop.xlane.xlu1 %373 }
 0x747   :  { %585 = vlog2.f32 %v374_v44  ;;  %v386_v46 = vpop.permute.xlu0 %385 }
 0x74c   :  { %v391_v49 = vpop.permute.xlu0 %390 }
 0x751   :  { %v586_v47 = vpop.eup %585  ;;  %v396_v53 = vpop.permute.xlu0 %395 }
 0x752   :  { %v376_v48 = vmul.f32 0.6931472, %v586_v47 }
 0x754   :  { %v377_v50 = vsub.f32 %v364_v28, %v376_v48 }
 0x756   :  { %v388_v51 = vadd.f32 %v386_v46, %v377_v50  ;;  %v383_v52 = vadd.f32 %v381_v45, %v377_v50  ;;  %v393_v54 = vadd.f32 %v391_v49, %v377_v50  ;;  %v398_v55 = vadd.f32 %v396_v53, %v377_v50  ;;  %v401_v56 = vpop.permute.xlu0 %400 }
 0x757   :  { %v403_v57 = vadd.f32 %v401_v56, %v377_v50 }
 0x758   :  { %409 = vrot.lane.b32.xlu0 %v388_v51, %s648_s12  ;;  %405 = vrot.lane.b32.xlu1 %v383_v52, %s649_s13 }
 0x75c   :  { %413 = vrot.lane.b32.xlu0 %v393_v54, %s650_s14 }
 0x760   :  { %417 = vrot.lane.b32.xlu0 %v398_v55, %s651_s15 }
 0x764   :  { %421 = vrot.lane.b32.xlu0 %v403_v57, %s652_s16 }
 0x7ca   :  { %v410_v58 = vpop.permute.xlu0 %409  ;;  %v406_v59 = vpop.permute.xlu1 %405 }
 0x7cb   :  { %v425_v61 = vsel %vm424_vm8, %v786_v21, %v406_v59 }
 0x7cc   :  { %v427_v63 = vsel %vm426_vm9, %v425_v61, %v410_v58 }
 0x7ce   :  { %v414_v60 = vpop.permute.xlu0 %413 }
 0x7cf   :  { %v429_v1 = vsel %vm428_vm10, %v427_v63, %v414_v60 }
 0x7d2   :  { %v418_v62 = vpop.permute.xlu0 %417 }
 0x7d3   :  { %v431_v2 = vsel %vm430_vm11, %v429_v1, %v418_v62 }
 0x7d6   :  { %v422_v3 = vpop.permute.xlu0 %421 }
 0x7d7   :  { %v433_v4 = vsel %vm432_vm12, %v431_v2, %v422_v3 }
 0x7d8   :  { %435 = vst.msk [vmem:[#allocation5] sm:$0xff] %vm434_vm13, %v433_v4 }
 0x7d9   :  { %620 = shalt.err (!%p617_p12)
}
 0x7da   :  { %s621_s22 = scalar_lea.hbm %s810_s5, 128 }
 0x7db   :  { %p622_p13 = scmp.ne.s32.totalorder %s810_s5, %s621_s22  ;;  %p625_p0 = scmp.lt.u32.totalorder %s621_s22, %s810_s5 }
 0x7dd   :  { %p627_p1 = pnand %p625_p0, %p622_p13 }
 0x7df   :  { %630 = shalt.err (!%p627_p1)
}
 0x7e0   :  { %445 = dma.vmem_to_hbm [thread:$0]  %s443_s18, 128, %s810_s5, [#allocation4]  }
 0x7e1   :  { %633 = dma.done.wait [#allocation4], 128  }
 0x7e2   :  { %634 = vsyncadd [#allocation4], 4294967168 }
 0x7e3   :  { %449 = vsyncpa [#allocation3], 1 }
 0x7e4   :  { %450 = vsyncpa [#allocation4], 1 }

</bundles_post_ra>
